<compile_context>
chip_gen: v6e
topology: v6e:2x2x1
jax: 0.10.0
libtpu: 0.0.40
codegen_flags: <defaults>
</compile_context>

<pallas_src>
import functools

import jax
import jax.numpy as jnp
import numpy as np
from jax.experimental import pallas as pl
from jax.experimental.pallas import tpu as pltpu

EPS = 1e-7          # LGCN eps for float32
MAX_NORM = 1000.0   # LGCN Lorentzian.max_norm (torch.renorm maxnorm)


def _round_up(x, m):
    return ((x + m - 1) // m) * m


def _pick_tile_n(n):
    """Row-tile heuristic: big tiles, but keep >=2 grid steps when possible."""
    n8 = _round_up(max(n, 8), 8)
    t = min(512, n8)
    if n8 // t < 2 and n8 >= 16:      # v7x has 2 TensorCores -> want >=2 grid steps
        t = max(8, (n8 // 2 // 8) * 8)
    return t


# ----------------------------- in-kernel math ------------------------------ #

def _exp_map_zero_tail_k(v, c):
    """exp_map_zero of the tangent vector [0, v] at the hyperboloid origin,
    followed by Lorentzian.normalize(). Returns (head, tail, ||tail||^2).
    Uses a single exp (cosh/sinh derived) + approx EUP reciprocals."""
    sqrt_c = float(np.sqrt(c))
    inv_sqrt_c = 1.0 / sqrt_c
    vsq = jnp.sum(v * v, axis=-1, keepdims=True)
    r = jnp.sqrt(jnp.maximum(vsq + EPS, 1e-6))          # Lorentzian l-norm of [0, v]
    s = jnp.minimum(r, 50.0)                             # clamp(max=50) inside cosh/sinh
    e = jnp.exp(s * inv_sqrt_c)                          # single EUP exp
    inv_e = pl.reciprocal(e, approx=True)
    cosh = 0.5 * (e + inv_e)
    sinh = 0.5 * (e - inv_e)
    head = sqrt_c * cosh
    tail = (sqrt_c * sinh) * pl.reciprocal(r, approx=True) * v
    # Lorentzian.normalize: renorm tail rows to MAX_NORM, recompute head on manifold
    tnorm = jnp.sqrt(jnp.sum(tail * tail, axis=-1, keepdims=True))
    scale = jnp.where(tnorm > MAX_NORM,
                      MAX_NORM * pl.reciprocal(tnorm + 1e-7, approx=True),
                      1.0)
    tail = tail * scale
    tail_sq = jnp.sum(tail * tail, axis=-1, keepdims=True)
    head = jnp.sqrt(c + tail_sq)
    return head, tail, tail_sq


def _log_map_zero_tail_k(head, tail, tail_sq, c):
    """log_map_zero of a hyperboloid point (head, tail). Time coordinate of the
    result is exactly 0; only the tail is returned."""
    sqrt_c = float(np.sqrt(c))
    inv_sqrt_c = 1.0 / sqrt_c
    z = head * inv_sqrt_c + EPS
    # matches LGCN's Arcosh.forward: log(x + sqrt(clamp(x^2 - 1, min)))
    dist = sqrt_c * jnp.log(z + jnp.sqrt(jnp.maximum(z * z - 1.0, 1e-7)))
    return (dist * jax.lax.rsqrt(tail_sq + EPS)) * tail


def _llgc_kernel(x_ref, wT_ref, b_ref, o_ref, *, c, use_bias):
    x = x_ref[...]                                       # (TN, F_pad) f32

    # ---- manifold.normalize_input(x, c): exp_map_zero([0, x]) ----
    h1, t1, s1 = _exp_map_zero_tail_k(x, c)

    # ---- LorentzLinear / matvec_regular ----
    x_tan_tail = _log_map_zero_tail_k(h1, t1, s1, c)     # (TN, F_pad)
    mx = jnp.dot(x_tan_tail, wT_ref[...],                # (TN, K_pad) on the MXU
                 preferred_element_type=jnp.float32)
    if use_bias:
        mx = mx + b_ref[...]
    # normalize_tangent_zero -> tangent vector [0, mx]; exp_map_zero back to manifold
    h2, t2, s2 = _exp_map_zero_tail_k(mx, c)
    # (torch's `where(all(mx==0), 0, mx)` branch is a no-op: head >= sqrt(c) > 0)

    # ---- final manifold.log_map_zero (lane-dense padded tail; zero column added
    #      and padding sliced off in the wrapper) ----
    o_ref[...] = _log_map_zero_tail_k(h2, t2, s2, c)     # (TN, K_pad)


# ------------------------------- wrapper ----------------------------------- #

def llgc_forward(x, w, b, *, c=1.0, use_bias=True, tile_n=None):
    """x: (N, nfeat) f32, w: (nclass-1, nfeat) f32, b: (nclass-1,) f32.
    Returns (N, nclass) f32 (first column is 0, as in the reference)."""
    x = jnp.asarray(x, jnp.float32)
    w = jnp.asarray(w, jnp.float32)
    b = jnp.asarray(b, jnp.float32)
    N, F = x.shape
    K = w.shape[0]
    nclass = K + 1

    F_pad = _round_up(F, 128)
    K_pad = _round_up(K, 128)

    if tile_n is None:
        tile_n = _pick_tile_n(N)
    tile_n = max(8, _round_up(tile_n, 8))

    # VMEM budget sized for v7x's 64 MiB (fits trivially on v5e/v6e's 128 MiB).
    vmem_budget = 64 * 1024 * 1024

    def _vmem_est(t):
        # double-buffered x/out tiles + resident (double-buffered) W^T and bias
        return 4 * (2 * t * (F_pad + K_pad) + 2 * F_pad * K_pad + 2 * K_pad)

    while tile_n > 8 and _vmem_est(tile_n) > vmem_budget // 2:
        tile_n = max(8, ((tile_n // 2) // 8) * 8)

    N_pad = _round_up(N, tile_n)

    # Zero padding is exactly neutral: padded features/rows/classes contribute 0
    # to every row-wise reduction and to the matmul, and are sliced off below.
    x_p = jnp.zeros((N_pad, F_pad), jnp.float32).at[:N, :F].set(x)
    wT_p = jnp.zeros((F_pad, K_pad), jnp.float32).at[:F, :K].set(w.T)
    b_p = jnp.zeros((1, K_pad), jnp.float32).at[0, :K].set(b)

    kernel = functools.partial(_llgc_kernel, c=float(c), use_bias=use_bias)
    cost = pl.CostEstimate(
        flops=int(2 * N_pad * F_pad * K_pad + 24 * N_pad * (F_pad + K_pad)),
        transcendentals=int(8 * N_pad),
        bytes_accessed=int(4 * (N_pad * F_pad + F_pad * K_pad + K_pad
                                + N_pad * K_pad)),
    )

    out_p = pl.pallas_call(
        kernel,
        out_shape=jax.ShapeDtypeStruct((N_pad, K_pad), jnp.float32),
        grid_spec=pltpu.PrefetchScalarGridSpec(
            num_scalar_prefetch=0,
            grid=(N_pad // tile_n,),
            in_specs=[
                pl.BlockSpec((tile_n, F_pad), lambda i: (i, 0)),
                pl.BlockSpec((F_pad, K_pad), lambda i: (0, 0)),
                pl.BlockSpec((1, K_pad), lambda i: (0, 0)),
            ],
            out_specs=pl.BlockSpec((tile_n, K_pad), lambda i: (i, 0)),
        ),
        compiler_params=pltpu.CompilerParams(
            dimension_semantics=("parallel",),
            vmem_limit_bytes=vmem_budget,
        ),
        cost_estimate=cost,
    )(x_p, wT_p, b_p)

    out_tail = out_p[:N, :K]
    zeros_col = jnp.zeros((N, 1), jnp.float32)
    out = jnp.concatenate([zeros_col, out_tail], axis=-1)
    assert out.shape == (N, nclass)
    return out


# --------------------------- exact-math reference --------------------------- #

def llgc_reference(x, w, b, *, c=1.0, use_bias=True):
    """Pure-JAX mirror of the torch math with exact divides and jnp.cosh/sinh
    (independent of the approx-reciprocal kernel path)."""
    x = jnp.asarray(x, jnp.float32)
    sqrt_c = jnp.sqrt(jnp.asarray(c, jnp.float32))

    def exp_map_zero_tail(v):
        vsq = jnp.sum(v * v, axis=-1, keepdims=True)
        r = jnp.sqrt(jnp.maximum(vsq + EPS, 1e-6))
        s = jnp.minimum(r, 50.0)
        head = sqrt_c * jnp.cosh(s / sqrt_c)
        tail = sqrt_c * jnp.sinh(s / sqrt_c) / r * v
        tnorm = jnp.sqrt(jnp.sum(tail * tail, axis=-1, keepdims=True))
        tail = jnp.where(tnorm > MAX_NORM, tail * (MAX_NORM / (tnorm + 1e-7)), tail)
        tail_sq = jnp.sum(tail * tail, axis=-1, keepdims=True)
        head = jnp.sqrt(c + tail_sq)
        return head, tail, tail_sq

    def log_map_zero_tail(head, tail, tail_sq):
        z = head / sqrt_c + EPS
        dist = sqrt_c * jnp.log(z + jnp.sqrt(jnp.maximum(z * z - 1.0, 1e-7)))
        return dist / jnp.sqrt(tail_sq + EPS) * tail

    h1, t1, s1 = exp_map_zero_tail(x)
    x_tan = log_map_zero_tail(h1, t1, s1)
    mx = x_tan @ jnp.asarray(w, jnp.float32).T
    if use_bias:
        mx = mx + jnp.asarray(b, jnp.float32)[None, :]
    h2, t2, s2 = exp_map_zero_tail(mx)
    out_tail = log_map_zero_tail(h2, t2, s2)
    return jnp.concatenate([jnp.zeros((x.shape[0], 1), jnp.float32), out_tail], -1)


if __name__ == "__main__":
    # Small demo shapes consistent with the module: N nodes, nfeat features, nclass classes.
    N, nfeat, nclass = 16, 32, 8
    drop_out, use_bias = 0.5, True   # dropout applies to the weight only in training mode
    # TODO(synk): training-mode weight dropout (F.dropout on W) is not modeled; eval mode only.

    key = jax.random.PRNGKey(0)
    kx, kw = jax.random.split(key)
    x = jax.random.normal(kx, (N, nfeat), dtype=jnp.float32)

    # LorentzLinear params: W (nclass-1, nfeat) xavier_uniform(gain=sqrt(2)), b = 0
    fan_out, fan_in = nclass - 1, nfeat
    limit = np.sqrt(2.0) * np.sqrt(6.0 / (fan_in + fan_out))
    W = jax.random.uniform(kw, (fan_out, fan_in), jnp.float32, -limit, limit)
    bias = jnp.zeros((fan_out,), jnp.float32)

    out = llgc_forward(x, W, bias, c=1.0, use_bias=use_bias)
    out = jax.block_until_ready(out)

    ref = jax.block_until_ready(llgc_reference(x, W, bias, c=1.0, use_bias=use_bias))
    # Tolerance loosened vs. the exact-divide reference because the kernel uses
    # approx EUP reciprocals (pl.reciprocal(approx=True)) per the perf review.
    np.testing.assert_allclose(np.asarray(out), np.asarray(ref), rtol=1e-2, atol=1e-2)
    assert out.shape == (N, nclass)
    print("KERNEL_OK")
</pallas_src>

<mosaic_0001>
module attributes {stable_mosaic.version = 11 : i64} {
  func.func @_llgc_kernel(%arg0: i32, %arg1: memref<8x128xf32, #tpu.memory_space<vmem>>, %arg2: memref<128x128xf32, #tpu.memory_space<vmem>>, %arg3: memref<1x128xf32, #tpu.memory_space<vmem>>, %arg4: memref<8x128xf32, #tpu.memory_space<vmem>>) attributes {dimension_semantics = [#tpu.dimension_semantics<parallel>], iteration_bounds = array<i64: 2>, scalar_prefetch = 0 : i64, scratch_operands = 0 : i64, tpu.core_type = #tpu.core_type<tc>, window_params = [{transform_indices = @transform_0, window_bounds = array<i64: 8, 128>}, {pipeline_mode = #tpu.pipeline_mode<synchronous>, transform_indices = @transform_1, window_bounds = array<i64: 128, 128>}, {pipeline_mode = #tpu.pipeline_mode<synchronous>, transform_indices = @transform_2, window_bounds = array<i64: 1, 128>}, {transform_indices = @transform_3, window_bounds = array<i64: 8, 128>}]} {
    %c0 = arith.constant 0 : index
    %c0_0 = arith.constant 0 : index
    %0 = vector.load %arg1[%c0, %c0_0] : memref<8x128xf32, #tpu.memory_space<vmem>>, vector<8x128xf32>
    %1 = arith.mulf %0, %0 : vector<8x128xf32>
    %cst = arith.constant dense<0.000000e+00> : vector<8xf32>
    %2 = vector.multi_reduction <add>, %1, %cst [1] : vector<8x128xf32> to vector<8xf32>
    %3 = vector.shape_cast %2 : vector<8xf32> to vector<8x1xf32>
    %cst_1 = arith.constant 1.000000e-07 : f32
    %4 = vector.broadcast %cst_1 : f32 to vector<8x1xf32>
    %5 = arith.addf %3, %4 : vector<8x1xf32>
    %cst_2 = arith.constant 9.99999997E-7 : f32
    %6 = vector.broadcast %cst_2 : f32 to vector<8x1xf32>
    %7 = arith.maximumf %5, %6 : vector<8x1xf32>
    %8 = math.sqrt %7 : vector<8x1xf32>
    %cst_3 = arith.constant 5.000000e+01 : f32
    %9 = vector.broadcast %cst_3 : f32 to vector<8x1xf32>
    %10 = arith.minimumf %8, %9 : vector<8x1xf32>
    %cst_4 = arith.constant 1.000000e+00 : f32
    %11 = vector.broadcast %cst_4 : f32 to vector<8x1xf32>
    %12 = arith.mulf %10, %11 : vector<8x1xf32>
    %13 = math.exp %12 : vector<8x1xf32>
    %14 = tpu.reciprocal %13 {approx = true} : vector<8x1xf32> -> vector<8x1xf32>
    %15 = arith.subf %13, %14 : vector<8x1xf32>
    %cst_5 = arith.constant 5.000000e-01 : f32
    %16 = vector.broadcast %cst_5 : f32 to vector<8x1xf32>
    %17 = arith.mulf %16, %15 : vector<8x1xf32>
    %cst_6 = arith.constant 1.000000e+00 : f32
    %18 = vector.broadcast %cst_6 : f32 to vector<8x1xf32>
    %19 = arith.mulf %18, %17 : vector<8x1xf32>
    %20 = tpu.reciprocal %8 {approx = true} : vector<8x1xf32> -> vector<8x1xf32>
    %21 = arith.mulf %19, %20 : vector<8x1xf32>
    %22 = vector.broadcast %21 : vector<8x1xf32> to vector<8x128xf32>
    %23 = arith.mulf %22, %0 : vector<8x128xf32>
    %24 = arith.mulf %23, %23 : vector<8x128xf32>
    %cst_7 = arith.constant dense<0.000000e+00> : vector<8xf32>
    %25 = vector.multi_reduction <add>, %24, %cst_7 [1] : vector<8x128xf32> to vector<8xf32>
    %26 = vector.shape_cast %25 : vector<8xf32> to vector<8x1xf32>
    %27 = math.sqrt %26 : vector<8x1xf32>
    %cst_8 = arith.constant 1.000000e+03 : f32
    %28 = vector.broadcast %cst_8 : f32 to vector<8x1xf32>
    %29 = arith.cmpf ogt, %27, %28 : vector<8x1xf32>
    %cst_9 = arith.constant 1.000000e-07 : f32
    %30 = vector.broadcast %cst_9 : f32 to vector<8x1xf32>
    %31 = arith.addf %27, %30 : vector<8x1xf32>
    %32 = tpu.reciprocal %31 {approx = true} : vector<8x1xf32> -> vector<8x1xf32>
    %cst_10 = arith.constant 1.000000e+03 : f32
    %33 = vector.broadcast %cst_10 : f32 to vector<8x1xf32>
    %34 = arith.mulf %33, %32 : vector<8x1xf32>
    %cst_11 = arith.constant 1.000000e+00 : f32
    %35 = vector.broadcast %cst_11 : f32 to vector<8x1xf32>
    %36 = arith.select %29, %34, %35 : vector<8x1xi1>, vector<8x1xf32>
    %37 = vector.broadcast %36 : vector<8x1xf32> to vector<8x128xf32>
    %38 = arith.mulf %23, %37 : vector<8x128xf32>
    %39 = arith.mulf %38, %38 : vector<8x128xf32>
    %cst_12 = arith.constant dense<0.000000e+00> : vector<8xf32>
    %40 = vector.multi_reduction <add>, %39, %cst_12 [1] : vector<8x128xf32> to vector<8xf32>
    %41 = vector.shape_cast %40 : vector<8xf32> to vector<8x1xf32>
    %cst_13 = arith.constant 1.000000e+00 : f32
    %42 = vector.broadcast %cst_13 : f32 to vector<8x1xf32>
    %43 = arith.addf %42, %41 : vector<8x1xf32>
    %44 = math.sqrt %43 : vector<8x1xf32>
    %cst_14 = arith.constant 1.000000e+00 : f32
    %45 = vector.broadcast %cst_14 : f32 to vector<8x1xf32>
    %46 = arith.mulf %44, %45 : vector<8x1xf32>
    %cst_15 = arith.constant 1.000000e-07 : f32
    %47 = vector.broadcast %cst_15 : f32 to vector<8x1xf32>
    %48 = arith.addf %46, %47 : vector<8x1xf32>
    %49 = arith.mulf %48, %48 : vector<8x1xf32>
    %cst_16 = arith.constant 1.000000e+00 : f32
    %50 = vector.broadcast %cst_16 : f32 to vector<8x1xf32>
    %51 = arith.subf %49, %50 : vector<8x1xf32>
    %cst_17 = arith.constant 1.000000e-07 : f32
    %52 = vector.broadcast %cst_17 : f32 to vector<8x1xf32>
    %53 = arith.maximumf %51, %52 : vector<8x1xf32>
    %54 = math.sqrt %53 : vector<8x1xf32>
    %55 = arith.addf %48, %54 : vector<8x1xf32>
    %56 = math.log %55 : vector<8x1xf32>
    %cst_18 = arith.constant 1.000000e+00 : f32
    %57 = vector.broadcast %cst_18 : f32 to vector<8x1xf32>
    %58 = arith.mulf %57, %56 : vector<8x1xf32>
    %cst_19 = arith.constant 1.000000e-07 : f32
    %59 = vector.broadcast %cst_19 : f32 to vector<8x1xf32>
    %60 = arith.addf %41, %59 : vector<8x1xf32>
    %61 = math.rsqrt %60 : vector<8x1xf32>
    %62 = arith.mulf %58, %61 : vector<8x1xf32>
    %63 = vector.broadcast %62 : vector<8x1xf32> to vector<8x128xf32>
    %64 = arith.mulf %63, %38 : vector<8x128xf32>
    %c0_20 = arith.constant 0 : index
    %c0_21 = arith.constant 0 : index
    %65 = vector.load %arg2[%c0_20, %c0_21] : memref<128x128xf32, #tpu.memory_space<vmem>>, vector<128x128xf32>
    %cst_22 = arith.constant dense<0.000000e+00> : vector<8x128xf32>
    %66 = tpu.matmul %64, %65, %cst_22 {dimension_numbers = #tpu.dot_dimension_numbers<[1], [0], [0], [1], [0, 0, 1, 1], [], []>} : vector<8x128xf32>, vector<128x128xf32>, vector<8x128xf32> -> vector<8x128xf32>
    %c0_23 = arith.constant 0 : index
    %c0_24 = arith.constant 0 : index
    %67 = vector.load %arg3[%c0_23, %c0_24] : memref<1x128xf32, #tpu.memory_space<vmem>>, vector<1x128xf32>
    %68 = vector.broadcast %67 : vector<1x128xf32> to vector<8x128xf32>
    %69 = arith.addf %66, %68 : vector<8x128xf32>
    %70 = arith.mulf %69, %69 : vector<8x128xf32>
    %cst_25 = arith.constant dense<0.000000e+00> : vector<8xf32>
    %71 = vector.multi_reduction <add>, %70, %cst_25 [1] : vector<8x128xf32> to vector<8xf32>
    %72 = vector.shape_cast %71 : vector<8xf32> to vector<8x1xf32>
    %cst_26 = arith.constant 1.000000e-07 : f32
    %73 = vector.broadcast %cst_26 : f32 to vector<8x1xf32>
    %74 = arith.addf %72, %73 : vector<8x1xf32>
    %cst_27 = arith.constant 9.99999997E-7 : f32
    %75 = vector.broadcast %cst_27 : f32 to vector<8x1xf32>
    %76 = arith.maximumf %74, %75 : vector<8x1xf32>
    %77 = math.sqrt %76 : vector<8x1xf32>
    %cst_28 = arith.constant 5.000000e+01 : f32
    %78 = vector.broadcast %cst_28 : f32 to vector<8x1xf32>
    %79 = arith.minimumf %77, %78 : vector<8x1xf32>
    %cst_29 = arith.constant 1.000000e+00 : f32
    %80 = vector.broadcast %cst_29 : f32 to vector<8x1xf32>
    %81 = arith.mulf %79, %80 : vector<8x1xf32>
    %82 = math.exp %81 : vector<8x1xf32>
    %83 = tpu.reciprocal %82 {approx = true} : vector<8x1xf32> -> vector<8x1xf32>
    %84 = arith.subf %82, %83 : vector<8x1xf32>
    %cst_30 = arith.constant 5.000000e-01 : f32
    %85 = vector.broadcast %cst_30 : f32 to vector<8x1xf32>
    %86 = arith.mulf %85, %84 : vector<8x1xf32>
    %cst_31 = arith.constant 1.000000e+00 : f32
    %87 = vector.broadcast %cst_31 : f32 to vector<8x1xf32>
    %88 = arith.mulf %87, %86 : vector<8x1xf32>
    %89 = tpu.reciprocal %77 {approx = true} : vector<8x1xf32> -> vector<8x1xf32>
    %90 = arith.mulf %88, %89 : vector<8x1xf32>
    %91 = vector.broadcast %90 : vector<8x1xf32> to vector<8x128xf32>
    %92 = arith.mulf %91, %69 : vector<8x128xf32>
    %93 = arith.mulf %92, %92 : vector<8x128xf32>
    %cst_32 = arith.constant dense<0.000000e+00> : vector<8xf32>
    %94 = vector.multi_reduction <add>, %93, %cst_32 [1] : vector<8x128xf32> to vector<8xf32>
    %95 = vector.shape_cast %94 : vector<8xf32> to vector<8x1xf32>
    %96 = math.sqrt %95 : vector<8x1xf32>
    %cst_33 = arith.constant 1.000000e+03 : f32
    %97 = vector.broadcast %cst_33 : f32 to vector<8x1xf32>
    %98 = arith.cmpf ogt, %96, %97 : vector<8x1xf32>
    %cst_34 = arith.constant 1.000000e-07 : f32
    %99 = vector.broadcast %cst_34 : f32 to vector<8x1xf32>
    %100 = arith.addf %96, %99 : vector<8x1xf32>
    %101 = tpu.reciprocal %100 {approx = true} : vector<8x1xf32> -> vector<8x1xf32>
    %cst_35 = arith.constant 1.000000e+03 : f32
    %102 = vector.broadcast %cst_35 : f32 to vector<8x1xf32>
    %103 = arith.mulf %102, %101 : vector<8x1xf32>
    %cst_36 = arith.constant 1.000000e+00 : f32
    %104 = vector.broadcast %cst_36 : f32 to vector<8x1xf32>
    %105 = arith.select %98, %103, %104 : vector<8x1xi1>, vector<8x1xf32>
    %106 = vector.broadcast %105 : vector<8x1xf32> to vector<8x128xf32>
    %107 = arith.mulf %92, %106 : vector<8x128xf32>
    %108 = arith.mulf %107, %107 : vector<8x128xf32>
    %cst_37 = arith.constant dense<0.000000e+00> : vector<8xf32>
    %109 = vector.multi_reduction <add>, %108, %cst_37 [1] : vector<8x128xf32> to vector<8xf32>
    %110 = vector.shape_cast %109 : vector<8xf32> to vector<8x1xf32>
    %cst_38 = arith.constant 1.000000e+00 : f32
    %111 = vector.broadcast %cst_38 : f32 to vector<8x1xf32>
    %112 = arith.addf %111, %110 : vector<8x1xf32>
    %113 = math.sqrt %112 : vector<8x1xf32>
    %cst_39 = arith.constant 1.000000e+00 : f32
    %114 = vector.broadcast %cst_39 : f32 to vector<8x1xf32>
    %115 = arith.mulf %113, %114 : vector<8x1xf32>
    %cst_40 = arith.constant 1.000000e-07 : f32
    %116 = vector.broadcast %cst_40 : f32 to vector<8x1xf32>
    %117 = arith.addf %115, %116 : vector<8x1xf32>
    %118 = arith.mulf %117, %117 : vector<8x1xf32>
    %cst_41 = arith.constant 1.000000e+00 : f32
    %119 = vector.broadcast %cst_41 : f32 to vector<8x1xf32>
    %120 = arith.subf %118, %119 : vector<8x1xf32>
    %cst_42 = arith.constant 1.000000e-07 : f32
    %121 = vector.broadcast %cst_42 : f32 to vector<8x1xf32>
    %122 = arith.maximumf %120, %121 : vector<8x1xf32>
    %123 = math.sqrt %122 : vector<8x1xf32>
    %124 = arith.addf %117, %123 : vector<8x1xf32>
    %125 = math.log %124 : vector<8x1xf32>
    %cst_43 = arith.constant 1.000000e+00 : f32
    %126 = vector.broadcast %cst_43 : f32 to vector<8x1xf32>
    %127 = arith.mulf %126, %125 : vector<8x1xf32>
    %cst_44 = arith.constant 1.000000e-07 : f32
    %128 = vector.broadcast %cst_44 : f32 to vector<8x1xf32>
    %129 = arith.addf %110, %128 : vector<8x1xf32>
    %130 = math.rsqrt %129 : vector<8x1xf32>
    %131 = arith.mulf %127, %130 : vector<8x1xf32>
    %132 = vector.broadcast %131 : vector<8x1xf32> to vector<8x128xf32>
    %133 = arith.mulf %132, %107 : vector<8x128xf32>
    %c0_45 = arith.constant 0 : index
    %c0_46 = arith.constant 0 : index
    %134 = vector.load %arg4[%c0_45, %c0_46] : memref<8x128xf32, #tpu.memory_space<vmem>>, vector<8x128xf32>
    tpu.vector_store %arg4[%c0_45, %c0_46], %133 {strides = array<i32>} : memref<8x128xf32, #tpu.memory_space<vmem>>, vector<8x128xf32>,
    return
  }
  func.func @transform_0(%arg0: i32) -> (i32, i32) {
    %c0_i32 = arith.constant 0 : i32
    %c0_i32_0 = arith.constant 0 : i32
    return %arg0, %c0_i32 : i32, i32
  }
  func.func @transform_1(%arg0: i32) -> (i32, i32) {
    %c0_i32 = arith.constant 0 : i32
    %c0_i32_0 = arith.constant 0 : i32
    %c0_i32_1 = arith.constant 0 : i32
    return %c0_i32, %c0_i32_0 : i32, i32
  }
  func.func @transform_2(%arg0: i32) -> (i32, i32) {
    %c0_i32 = arith.constant 0 : i32
    %c0_i32_0 = arith.constant 0 : i32
    %c0_i32_1 = arith.constant 0 : i32
    return %c0_i32, %c0_i32_0 : i32, i32
  }
  func.func @transform_3(%arg0: i32) -> (i32, i32) {
    %c0_i32 = arith.constant 0 : i32
    %c0_i32_0 = arith.constant 0 : i32
    return %arg0, %c0_i32 : i32, i32
  }
}

</mosaic_0001>

<bundles_post_ra>
// kernel: tpu_custom_call.1
= control target key start
LH: loop header
LB: loop body
LE: loop exit
PB: predicated region body
PF: predicated region fallthrough
CT: control target
= control target key end

     0   :  { %8 = vsyncpa [#allocation3], 0  ;;  %s1009_s0 = inlined_call_operand.hbm [shape: f32[16,128], index: 0, kind: input, shape index: {}]   ;;  %s1010_s1 = inlined_call_operand.hbm [shape: f32[128,128], index: 1, kind: input, shape index: {}]   ;;  %s1011_s2 = inlined_call_operand.vmem [shape: f32[1,128], index: 2, kind: input, shape index: {}]   ;;  %s1012_s3 = inlined_call_operand.hbm [shape: f32[16,128], index: 3, kind: output, shape index: {}]  }
   0x1   :  { %10 = vsyncpa [#allocation3 + $0x1], 0 }
   0x2   :  { %11 = vsyncpa [#allocation6], 0 }
   0x3   :  { %12 = vsyncpa [#allocation4], 0 }
   0x4   :  { %14 = vsyncpa [#allocation4 + $0x1], 0  ;;  %s843_s12 = smov 0   ;;  %s845_s13 = smov 0  }
   0x5   :  { %s847_s14 = smov 0   ;;  %s849_s15 = smov 0  }
   0x6 LB: > { %s864_s16 = sadd.s32 4294967295, %s814_s15   ;;  %s522_s17 = sadd.s32 4294967294, %s814_s15   ;;  %s814_s15 = sphi %s849_s15, %s1034_s15   ;;  %s810_s14 = sphi %s847_s14, %s1033_s14   ;;  %s806_s13 = sphi %s845_s13, %s1032_s13   ;;  %s802_s12 = sphi %s843_s12, %s1031_s12  }
   0x7   : > { %p40_p0 = scmp.ne.s32.totalorder %s806_s13, %s802_s12  ;;  %p1013_p1 = scmp.eq.s32.totalorder %s864_s16, 0 }
   0x8   : > { %p112_p3 = scmp.eq.s32.totalorder %s522_s17, 1  ;;  %p523_p5 = scmp.ge.s32.totalorder %s814_s15, 1 }
   0x9   : > { %p873_p4 = por %p1013_p1, %p40_p0  ;;  %p119_p7 = scmp.lt.s32.totalorder %s814_s15, 3 }
   0xa   : > { %p878_p6 = por %p112_p3, %p40_p0  ;;  %s816_s21 = smov [#allocation5]  }
   0xb   : > { %s1017_s18 = scalar_select %p873_p4, 1, 0 }
   0xc   : > { %s1018_s19 = scalar_select %p878_p6, 1, 0 }
   0xd   : > { %p883_p8 = pnand %p523_p5, %p119_p7  ;;  %s131_s22 = sshll.u32 %s816_s21, 4  ;;  %s132_s22 = int_to_ptr.vmem [resolvable:$true] %s131_s22 }
   0xe   : > { %s897_s24 = sadd.s32 1, %s814_s15   ;;  %s27_s25 = sadd.s32 1, %s810_s14 }
   0xf   : > { %s1019_s20 = scalar_select %p883_p8, 1, 0 }
  0x10   : > { %p599_p9 = pneg %p883_p8  ;;  %s24_s26 = ssub.s32 %s814_s15, %s897_s24 }
  0x11   : > { %s703_s27 = scalar_lea.vmem %s132_s22, 2048  ;;  %p711_p5 = scmp.lt.s32.totalorder %s132_s22, %s132_s22 }
  0x12   : > { %p892_p11 = pnand %p599_p9, %p1013_p1  ;;  %p704_p13 = scmp.ne.s32.totalorder %s132_s22, %s703_s27 }
  0x13   : > { %p712_p7 = scmp.lt.s32.totalorder %s703_s27, %s703_s27 }
  0x14   : > { %p694_p12 = pneg %p892_p11 }
  0x15   : > { %p713_p10 = por %p712_p7, %p711_p5 }
  0x16   : > { %p706_p0 = pnand %p704_p13, %p694_p12 }
  0x18   : > { %p707_p3 = pneg %p706_p0 }
  0x1a   : > { %p714_p2 = pnand %p713_p10, %p707_p3 }
  0x1c   : > { %717 = shalt.err (!%p714_p2)
}
  0x1d   : > { %s817_s28 = smov 128   ;;  %s818_s29 = smov 8  }
  0x1e   : > { %602 = dma.hbm_to_vmem [thread:$0]  (!%p892_p11), %s1010_s1, 2048, %s132_s22, [#allocation6], %s817_s28, %s817_s28, %s818_s29  }
  0x1f   : > { %p25_p9 = scmp.eq.s32.totalorder %s24_s26, 0  ;;  %p34_p12 = scmp.ne.s32.totalorder %s810_s14, %s806_s13 }
  0x20   : > { %p35_p10 = scmp.eq.s32.totalorder %s814_s15, 0  ;;  %p612_p2 = scmp.lt.s32.totalorder %s814_s15, 2 }
  0x21   : > { %s914_s5 = scalar_select %p25_p9, %s810_s14, %s27_s25  }
  0x22   : > { %p36_p13 = por %p35_p10, %p34_p12  ;;  %p1021_p0 = scmp.eq.s32.totalorder %s864_s16, 1 }
  0x23   : > { %s148_s7 = sand.u32 1, %s810_s14   ;;  %s527_s8 = sshll.u32 %s814_s15, 7 }
  0x24   : > { %p918_p3 = por %p1021_p0, %p34_p12  ;;  %s526_s9 = sshll.u32 %s148_s7, 3 }
  0x25   : > { %s927_s17 = scalar_lea.hbm %s1009_s0, %s527_s8  ;;  %s152_s21 = scalar_lea.vmem [#allocation2], %s526_s9 }
  0x26   : > { %s1022_s6 = scalar_select %p918_p3, 1, 0 }
  0x27   : > { %s159_s22 = sshll.u32 %s152_s21, 4  ;;  %p929_p11 = pnand %p612_p2, %p36_p13  ;;  %s160_s22 = int_to_ptr.vmem [resolvable:$true] %s159_s22 }
  0x28   : > { %s149_s25 = scalar_lea.sflag [#allocation3], %s148_s7  ;;  %s718_s26 = scalar_lea.hbm %s927_s17, 128 }
  0x29   : > { %p719_p5 = scmp.ne.s32.totalorder %s927_s17, %s718_s26  ;;  %p720_p7 = pneg %p929_p11 }
  0x2a   : > { %s723_s29 = scalar_lea.hbm %s1009_s0, 256  ;;  %p724_p10 = scmp.lt.s32.totalorder %s927_s17, %s1009_s0 }
  0x2b   : > { %p721_p9 = pnand %p720_p7, %p719_p5  ;;  %p725_p2 = scmp.lt.s32.totalorder %s723_s29, %s718_s26 }
  0x2d   : > { %p722_p12 = pneg %p721_p9  ;;  %p726_p13 = por %p725_p2, %p724_p10 }
  0x2f   : > { %p727_p0 = pnand %p726_p13, %p722_p12 }
  0x31   : > { %730 = shalt.err (!%p727_p0)
}
  0x32   : > { %s731_s8 = scalar_lea.vmem %s160_s22, 128  ;;  %s819_s7 = smov [#allocation2]  }
  0x33   : > { %p732_p1 = scmp.ne.s32.totalorder %s160_s22, %s731_s8  ;;  %s736_s9 = sshll.u32 %s819_s7, 4  ;;  %s737_s9 = int_to_ptr.vmem [resolvable:$false] %s736_s9 }
  0x34   : > { %s738_s10 = scalar_lea.vmem %s737_s9, 256  ;;  %p739_p5 = scmp.lt.s32.totalorder %s160_s22, %s737_s9 }
  0x35   : > { %p734_p6 = pnand %p732_p1, %p720_p7  ;;  %p740_p9 = scmp.lt.s32.totalorder %s738_s10, %s731_s8 }
  0x37   : > { %p735_p3 = pneg %p734_p6  ;;  %p741_p4 = por %p740_p9, %p739_p5 }
  0x39   : > { %p742_p8 = pnand %p741_p4, %p735_p3 }
  0x3b   : > { %745 = shalt.err (!%p742_p8)
}
  0x3c   : > { %606 = dma.hbm_to_vmem [thread:$0]  (!%p929_p11), %s927_s17, 128, %s160_s22, %s149_s25  }
  0x3d   : > { %p1024_p12 = scmp.ne.s32.totalorder %s1019_s20, 0 }
  0x3e   : > { %s950_s11 = sand.u32 (!%p1024_p12), 1, %s806_s13   ;;  %p1025_p1 = scmp.ne.s32.totalorder (!%p1024_p12), %s1017_s18, 0 }
  0x3f   : > { %168 = sbr.rel (%p1024_p12) target bundleno = 1459 (0x5b3), region = 32  ;;  %s529_s21 = sshll.u32 (!%p1024_p12), %s950_s11, 3 }
  0x40   : > { %s171_s26 = scalar_lea.sflag (!%p1024_p12), [#allocation3], %s950_s11  ;;  %s174_s27 = scalar_lea.vmem (!%p1024_p12), [#allocation2], %s529_s21 }
  0x44   : > { %789 = dma.done.wait (%p1025_p1), %s171_s26, 128  }
  0x45   : > { %791 = vsyncadd (%p1025_p1), %s171_s26, 4294967168  ;;  %p1026_p4 = scmp.eq.s32.totalorder %s864_s16, 0 }
  0x47   : > { %793 = dma.done.wait (%p1026_p4), [#allocation6], 2048   ;;  %p1027_p6 = pmov %p1026_p4 }
  0x48   : > { %v201_v0 = vld [vmem:[%s174_s27] sm:$0xff]  ;;  %v820_v33 = vmov 0.0   ;;  %vm821_vm5 = vmmov 0   ;;  %v281_v35 = vld [vmem:[#allocation5 + $0x68] sm:$0xff]  ;;  %v280_v36 = vld [vmem:[#allocation5 + $0x60] sm:$0xff]  ;;  %s536_s17 = sshll.u32 %s864_s16, 7 }
  0x49   : > { %795 = vsyncadd (%p1027_p6), [#allocation6], 4294965248  ;;  %v202_v1 = vmul.f32 %v201_v0, %v201_v0  ;;  %v283_v32 = vld [vmem:[#allocation5 + $0x78] sm:$0xff]  ;;  %556 = vmatprep.subr.mxu0 %v820_v33  ;;  %v282_v34 = vld [vmem:[#allocation5 + $0x70] sm:$0xff]  ;;  %588 = vmatprep.mubr.msk.f32.mxu0 %vm821_vm5, %v820_v33  ;;  %s200_s22 = scalar_lea.vmem [#allocation7], %s529_s21  ;;  %s440_s29 = scalar_lea.hbm %s1012_s3, %s536_s17 }
  0x4a   : > { %557 = vmatpush3.msra.mxu0 %v283_v32  ;;  %v279_v37 = vld [vmem:[#allocation5 + $0x58] sm:$0xff]  ;;  %v278_v38 = vld [vmem:[#allocation5 + $0x50] sm:$0xff]  ;;  %v277_v39 = vld [vmem:[#allocation5 + $0x48] sm:$0xff]  ;;  %s442_s23 = sshll.u32 %s200_s22, 4  ;;  %s429_s30 = scalar_lea.sflag [#allocation4], %s950_s11  ;;  %s443_s23 = int_to_ptr.vmem [resolvable:$true] %s442_s23 }
  0x4b   : > { %203 = vadd.xlane.f32.xlu0 %v202_v1  ;;  %558 = vmatprep.subr.mxu0 %v820_v33  ;;  %v276_v40 = vld [vmem:[#allocation5 + $0x40] sm:$0xff]  ;;  %v275_v41 = vld [vmem:[#allocation5 + $0x38] sm:$0xff]  ;;  %v274_v42 = vld [vmem:[#allocation5 + $0x30] sm:$0xff]  ;;  %s746_s4 = scalar_lea.vmem %s443_s23, 128  ;;  %p1028_p3 = scmp.ne.s32.totalorder %s1022_s6, 0 }
  0x4c   : > { %559 = vmatpush3.msra.mxu0 %v282_v34  ;;  %v273_v43 = vld [vmem:[#allocation5 + $0x28] sm:$0xff]  ;;  %v272_v44 = vld [vmem:[#allocation5 + $0x20] sm:$0xff]  ;;  %v271_v45 = vld [vmem:[#allocation5 + $0x18] sm:$0xff]  ;;  %p747_p8 = scmp.ne.s32.totalorder %s443_s23, %s746_s4  ;;  %s822_s8 = smov [#allocation7]  }
  0x4d   : > { %560 = vmatprep.subr.mxu0 %v820_v33  ;;  %v270_v46 = vld [vmem:[#allocation5 + $0x10] sm:$0xff]  ;;  %v269_v47 = vld [vmem:[#allocation5 + $0x8] sm:$0xff]  ;;  %v268_v48 = vld [vmem:[#allocation5] sm:$0xff]  ;;  %s750_s7 = sshll.u32 %s822_s8, 4  ;;  %s751_s7 = int_to_ptr.vmem [resolvable:$false] %s750_s7 }
  0x4e   : > { %561 = vmatpush3.msra.mxu0 %v281_v35  ;;  %p748_p11 = pnand %p747_p8, %p1028_p3  ;;  %s752_s16 = scalar_lea.vmem %s751_s7, 256 }
  0x4f   : > { %562 = vmatprep.subr.mxu0 %v820_v33  ;;  %p753_p10 = scmp.lt.s32.totalorder %s443_s23, %s751_s7  ;;  %p754_p2 = scmp.lt.s32.totalorder %s752_s16, %s746_s4 }
  0x50   : > { %563 = vmatpush3.msra.mxu0 %v280_v36  ;;  %p749_p7 = pneg %p748_p11 }
  0x51   : > { %564 = vmatprep.subr.mxu0 %v820_v33  ;;  %p755_p13 = por %p754_p2, %p753_p10 }
  0x52   : > { %565 = vmatpush3.msra.mxu0 %v279_v37 }
  0x53   : > { %566 = vmatprep.subr.mxu0 %v820_v33  ;;  %p756_p0 = pnand %p755_p13, %p749_p7 }
  0x54   : > { %567 = vmatpush3.msra.mxu0 %v278_v38 }
  0x55   : > { %568 = vmatprep.subr.mxu0 %v820_v33 }
  0x56   : > { %569 = vmatpush3.msra.mxu0 %v277_v39 }
  0x57   : > { %570 = vmatprep.subr.mxu0 %v820_v33 }
  0x58   : > { %571 = vmatpush3.msra.mxu0 %v276_v40 }
  0x59   : > { %572 = vmatprep.subr.mxu0 %v820_v33 }
  0x5a   : > { %573 = vmatpush3.msra.mxu0 %v275_v41 }
  0x5b   : > { %574 = vmatprep.subr.mxu0 %v820_v33 }
  0x5c   : > { %575 = vmatpush3.msra.mxu0 %v274_v42 }
  0x5d   : > { %576 = vmatprep.subr.mxu0 %v820_v33 }
  0x5e   : > { %577 = vmatpush3.msra.mxu0 %v273_v43 }
  0x5f   : > { %578 = vmatprep.subr.mxu0 %v820_v33 }
  0x60   : > { %579 = vmatpush3.msra.mxu0 %v272_v44 }
  0x61   : > { %580 = vmatprep.subr.mxu0 %v820_v33 }
  0x62   : > { %581 = vmatpush3.msra.mxu0 %v271_v45 }
  0x63   : > { %582 = vmatprep.subr.mxu0 %v820_v33 }
  0x64   : > { %583 = vmatpush3.msra.mxu0 %v270_v46 }
  0x65   : > { %584 = vmatprep.subr.mxu0 %v820_v33 }
  0x66   : > { %585 = vmatpush3.msra.mxu0 %v269_v47 }
  0x67   : > { %586 = vmatprep.subr.mxu0 %v820_v33 }
  0x68   : > { %587 = vmatpush3.msra.mxu0 %v268_v48 }
  0xd4   : > { %v204_v2 = vpop.xlane.xlu0 %203 }
  0xd5   : > { %v205_v3 = vadd.f32 1e-07, %v204_v2 }
  0xd7   : > { %v206_v4 = vmax.f32 %v205_v3, 1e-06 }
  0xd9   : > { %652 = vrsqrt.f32 %v206_v4  ;;  %vm209_vm0 = vcmp.eq.f32.partialorder %v206_v4, inf  ;;  %v212_v7 = vand.u32 2147483648, %v206_v4  ;;  %vm211_vm1 = vcmp.eq.f32.partialorder %v206_v4, 0.0 }
  0xe6   : > { %v653_v5 = vpop.eup %652 }
  0xe7   : > { %v208_v6 = vmul.f32 %v653_v5, %v206_v4 }
  0xe9   : > { %v210_v8 = vsel %vm209_vm0, %v206_v4, %v208_v6 }
  0xea   : > { %v213_v9 = vsel %vm211_vm1, %v212_v7, %v210_v8  ;;  %v533_v8 = vld [vmem:[%s1011_s2] ss:$0 sm:$0xff] }
  0xeb   : > { %v214_v10 = vmin.f32 %v213_v9, 50.0 }
  0xed   : > { %v215_v11 = vmul.f32 1.442695, %v214_v10 }
  0xef   : > { %654 = vpow2.f32 %v215_v11 }
  0xfc   : > { %v655_v12 = vpop.eup %654 }
  0xfd   : > { %656 = vrcp.f32 %v655_v12 }
  0xfe   : > { %658 = vrcp.f32 %v213_v9 }
 0x10a   : > { %v657_v13 = vpop.eup %656 }
 0x10b   : > { %v218_v14 = vsub.f32 %v655_v12, %v657_v13  ;;  %v659_v16 = vpop.eup %658 }
 0x10d   : > { %v219_v15 = vmul.f32 0.5, %v218_v14 }
 0x10f   : > { %v221_v17 = vmul.f32 %v659_v16, %v219_v15 }
 0x111   : > { %v222_v18 = vmul.f32 %v221_v17, %v201_v0 }
 0x113   : > { %v223_v19 = vmul.f32 %v222_v18, %v222_v18 }
 0x115   : > { %224 = vadd.xlane.f32.xlu0 %v223_v19 }
 0x19e   : > { %v225_v20 = vpop.xlane.xlu0 %224 }
 0x19f   : > { %660 = vrsqrt.f32 %v225_v20  ;;  %vm228_vm2 = vcmp.eq.f32.partialorder %v225_v20, inf  ;;  %v231_v23 = vand.u32 2147483648, %v225_v20  ;;  %vm230_vm3 = vcmp.eq.f32.partialorder %v225_v20, 0.0 }
 0x1ac   : > { %v661_v21 = vpop.eup %660 }
 0x1ad   : > { %v227_v22 = vmul.f32 %v661_v21, %v225_v20 }
 0x1af   : > { %v229_v24 = vsel %vm228_vm2, %v225_v20, %v227_v22 }
 0x1b0   : > { %v232_v25 = vsel %vm230_vm3, %v231_v23, %v229_v24 }
 0x1b1   : > { %v234_v26 = vadd.f32 1e-07, %v232_v25  ;;  %vm233_vm4 = vcmp.gt.f32.partialorder %v232_v25, 1000.0 }
 0x1b3   : > { %662 = vrcp.f32 %v234_v26 }
 0x1c0   : > { %v663_v27 = vpop.eup %662 }
 0x1c1   : > { %v236_v28 = vmul.f32 1000.0, %v663_v27 }
 0x1c3   : > { %v237_v29 = vsel %vm233_vm4, %v236_v28, 1.0 }
 0x1c4   : > { %v964_v30 = vmul.f32 %v237_v29, %v222_v18 }
 0x1c6   : > { %v239_v31 = vmul.f32 %v964_v30, %v964_v30 }
 0x1c8   : > { %240 = vadd.xlane.f32.xlu1 %v239_v31 }
 0x251   : > { %v241_v49 = vpop.xlane.xlu1 %240 }
 0x252   : > { %v242_v50 = vadd.f32 1.0, %v241_v49  ;;  %v264_v1 = vadd.f32 1e-07, %v241_v49 }
 0x254   : > { %664 = vrsqrt.f32 %v242_v50  ;;  %vm245_vm6 = vcmp.eq.f32.partialorder %v242_v50, inf  ;;  %v248_v53 = vand.u32 2147483648, %v242_v50  ;;  %vm247_vm7 = vcmp.eq.f32.partialorder %v242_v50, 0.0 }
 0x261   : > { %v665_v51 = vpop.eup %664 }
 0x262   : > { %v244_v52 = vmul.f32 %v665_v51, %v242_v50 }
 0x264   : > { %v246_v54 = vsel %vm245_vm6, %v242_v50, %v244_v52 }
 0x265   : > { %v249_v55 = vsel %vm247_vm7, %v248_v53, %v246_v54 }
 0x266   : > { %v250_v56 = vadd.f32 1e-07, %v249_v55 }
 0x268   : > { %v251_v57 = vmul.f32 %v250_v56, %v250_v56 }
 0x26a   : > { %v532_v58 = vadd.f32 -1.0, %v251_v57 }
 0x26c   : > { %v253_v59 = vmax.f32 %v532_v58, 1e-07 }
 0x26e   : > { %666 = vrsqrt.f32 %v253_v59  ;;  %vm256_vm8 = vcmp.eq.f32.partialorder %v253_v59, inf  ;;  %v259_v62 = vand.u32 2147483648, %v253_v59  ;;  %vm258_vm9 = vcmp.eq.f32.partialorder %v253_v59, 0.0 }
 0x27b   : > { %v667_v60 = vpop.eup %666 }
 0x27c   : > { %v255_v61 = vmul.f32 %v667_v60, %v253_v59 }
 0x27e   : > { %v257_v63 = vsel %vm256_vm8, %v253_v59, %v255_v61 }
 0x27f   : > { %v260_v0 = vsel %vm258_vm9, %v259_v62, %v257_v63 }
 0x280   : > { %v261_v2 = vadd.f32 %v260_v0, %v250_v56 }
 0x282   : > { %668 = vlog2.f32 %v261_v2 }
 0x283   : > { %670 = vrsqrt.f32 %v264_v1 }
 0x28f   : > { %v669_v3 = vpop.eup %668 }
 0x290   : > { %v263_v4 = vmul.f32 0.6931472, %v669_v3  ;;  %v671_v5 = vpop.eup %670 }
 0x292   : > { %v266_v6 = vmul.f32 %v671_v5, %v263_v4 }
 0x294   : > { %v267_v7 = vmul.f32 %v266_v6, %v964_v30 }
 0x296   : > { %589 = vmatmul.mubr.f32.vlgmr.msra.gmra.mxu0 %v267_v7 }
 0x356   : > { %v357_v9 = vpop.f32.mrf.mxu0 }
 0x357   : > { %v358_v10 = vadd.f32 %v533_v8, %v357_v9 }
 0x358   : > { %v590_v11 = vpop.f32.mrf.mxu0 }
 0x359   : > { %v361_v12 = vmul.f32 %v358_v10, %v358_v10 }
 0x35b   : > { %362 = vadd.xlane.f32.xlu1 %v361_v12 }
 0x3e4   : > { %v363_v13 = vpop.xlane.xlu1 %362 }
 0x3e5   : > { %v364_v14 = vadd.f32 1e-07, %v363_v13 }
 0x3e7   : > { %v365_v15 = vmax.f32 %v364_v14, 1e-06 }
 0x3e9   : > { %672 = vrsqrt.f32 %v365_v15  ;;  %vm368_vm10 = vcmp.eq.f32.partialorder %v365_v15, inf  ;;  %v371_v18 = vand.u32 2147483648, %v365_v15  ;;  %vm370_vm11 = vcmp.eq.f32.partialorder %v365_v15, 0.0 }
 0x3f6   : > { %v673_v16 = vpop.eup %672 }
 0x3f7   : > { %v367_v17 = vmul.f32 %v673_v16, %v365_v15 }
 0x3f9   : > { %v369_v19 = vsel %vm368_vm10, %v365_v15, %v367_v17 }
 0x3fa   : > { %v372_v20 = vsel %vm370_vm11, %v371_v18, %v369_v19 }
 0x3fb   : > { %v373_v21 = vmin.f32 %v372_v20, 50.0 }
 0x3fd   : > { %v374_v22 = vmul.f32 1.442695, %v373_v21 }
 0x3ff   : > { %674 = vpow2.f32 %v374_v22 }
 0x40c   : > { %v675_v23 = vpop.eup %674 }
 0x40d   : > { %676 = vrcp.f32 %v675_v23 }
 0x40e   : > { %678 = vrcp.f32 %v372_v20 }
 0x41a   : > { %v677_v24 = vpop.eup %676 }
 0x41b   : > { %v377_v25 = vsub.f32 %v675_v23, %v677_v24  ;;  %v679_v27 = vpop.eup %678 }
 0x41d   : > { %v378_v26 = vmul.f32 0.5, %v377_v25 }
 0x41f   : > { %v380_v28 = vmul.f32 %v679_v27, %v378_v26 }
 0x421   : > { %v381_v29 = vmul.f32 %v380_v28, %v358_v10 }
 0x423   : > { %v382_v30 = vmul.f32 %v381_v29, %v381_v29 }
 0x425   : > { %383 = vadd.xlane.f32.xlu0 %v382_v30 }
 0x4ae   : > { %v384_v31 = vpop.xlane.xlu0 %383 }
 0x4af   : > { %680 = vrsqrt.f32 %v384_v31  ;;  %vm387_vm12 = vcmp.eq.f32.partialorder %v384_v31, inf  ;;  %v390_v34 = vand.u32 2147483648, %v384_v31  ;;  %vm389_vm13 = vcmp.eq.f32.partialorder %v384_v31, 0.0 }
 0x4bc   : > { %v681_v32 = vpop.eup %680 }
 0x4bd   : > { %v386_v33 = vmul.f32 %v681_v32, %v384_v31 }
 0x4bf   : > { %v388_v35 = vsel %vm387_vm12, %v384_v31, %v386_v33 }
 0x4c0   : > { %v391_v36 = vsel %vm389_vm13, %v390_v34, %v388_v35 }
 0x4c1   : > { %v393_v37 = vadd.f32 1e-07, %v391_v36  ;;  %vm392_vm14 = vcmp.gt.f32.partialorder %v391_v36, 1000.0 }
 0x4c3   : > { %682 = vrcp.f32 %v393_v37 }
 0x4d0   : > { %v683_v38 = vpop.eup %682 }
 0x4d1   : > { %v395_v39 = vmul.f32 1000.0, %v683_v38 }
 0x4d3   : > { %v396_v40 = vsel %vm392_vm14, %v395_v39, 1.0 }
 0x4d4   : > { %v397_v41 = vmul.f32 %v396_v40, %v381_v29 }
 0x4d6   : > { %v398_v42 = vmul.f32 %v397_v41, %v397_v41 }
 0x4d8   : > { %399 = vadd.xlane.f32.xlu1 %v398_v42 }
 0x561   : > { %v400_v43 = vpop.xlane.xlu1 %399 }
 0x562   : > { %v401_v44 = vadd.f32 1.0, %v400_v43  ;;  %v423_v59 = vadd.f32 1e-07, %v400_v43 }
 0x564   : > { %684 = vrsqrt.f32 %v401_v44  ;;  %vm404_vm15 = vcmp.eq.f32.partialorder %v401_v44, inf  ;;  %v407_v47 = vand.u32 2147483648, %v401_v44  ;;  %vm406_vm0 = vcmp.eq.f32.partialorder %v401_v44, 0.0 }
 0x571   : > { %v685_v45 = vpop.eup %684 }
 0x572   : > { %v403_v46 = vmul.f32 %v685_v45, %v401_v44 }
 0x574   : > { %v405_v48 = vsel %vm404_vm15, %v401_v44, %v403_v46 }
 0x575   : > { %v408_v49 = vsel %vm406_vm0, %v407_v47, %v405_v48 }
 0x576   : > { %v409_v50 = vadd.f32 1e-07, %v408_v49 }
 0x578   : > { %v410_v51 = vmul.f32 %v409_v50, %v409_v50 }
 0x57a   : > { %v534_v52 = vadd.f32 -1.0, %v410_v51 }
 0x57c   : > { %v412_v53 = vmax.f32 %v534_v52, 1e-07 }
 0x57e   : > { %686 = vrsqrt.f32 %v412_v53  ;;  %vm415_vm1 = vcmp.eq.f32.partialorder %v412_v53, inf  ;;  %v418_v56 = vand.u32 2147483648, %v412_v53  ;;  %vm417_vm2 = vcmp.eq.f32.partialorder %v412_v53, 0.0 }
 0x58b   : > { %v687_v54 = vpop.eup %686 }
 0x58c   : > { %v414_v55 = vmul.f32 %v687_v54, %v412_v53 }
 0x58e   : > { %v416_v57 = vsel %vm415_vm1, %v412_v53, %v414_v55 }
 0x58f   : > { %v419_v58 = vsel %vm417_vm2, %v418_v56, %v416_v57 }
 0x590   : > { %v420_v60 = vadd.f32 %v419_v58, %v409_v50 }
 0x592   : > { %688 = vlog2.f32 %v420_v60 }
 0x593   : > { %690 = vrsqrt.f32 %v423_v59 }
 0x59f   : > { %v689_v61 = vpop.eup %688 }
 0x5a0   : > { %v422_v62 = vmul.f32 0.6931472, %v689_v61  ;;  %v691_v63 = vpop.eup %690 }
 0x5a2   : > { %v425_v0 = vmul.f32 %v691_v63, %v422_v62 }
 0x5a4   : > { %v426_v1 = vmul.f32 %v425_v0, %v397_v41 }
 0x5a6   : > { %427 = vst [vmem:[%s200_s22] sm:$0xff] %v426_v1 }
 0x5a7   : > { %759 = shalt.err (!%p756_p0)
}
 0x5a8   : > { %s760_s9 = scalar_lea.hbm %s440_s29, 128  ;;  %s764_s21 = scalar_lea.hbm %s1012_s3, 256 }
 0x5a9   : > { %p761_p5 = scmp.ne.s32.totalorder %s440_s29, %s760_s9  ;;  %p765_p1 = scmp.lt.s32.totalorder %s440_s29, %s1012_s3 }
 0x5aa   : > { %p766_p4 = scmp.lt.s32.totalorder %s764_s21, %s760_s9 }
 0x5ab   : > { %p762_p9 = pnand %p761_p5, %p1028_p3 }
 0x5ac   : > { %p767_p6 = por %p766_p4, %p765_p1 }
 0x5ad   : > { %p763_p12 = pneg %p762_p9 }
 0x5af   : > { %p768_p8 = pnand %p767_p6, %p763_p12 }
 0x5b1   : > { %771 = shalt.err (!%p768_p8)
}
 0x5b2   : > { %597 = dma.vmem_to_hbm [thread:$0]  (%p1028_p3), %s443_s23, 128, %s440_s29, %s429_s30  }
 0x5b3 PF: > { %s454_s18 = sand.u32 1, %s802_s12   ;;  %p1029_p11 = scmp.ne.s32.totalorder %s1018_s19, 0 }
 0x5b4   : > { %p1030_p7 = scmp.ge.s32.totalorder %s814_s15, 2  ;;  %s455_s20 = scalar_lea.sflag [#allocation4], %s454_s18 }
 0x5b6   : > { %p608_p10 = pnand %p1030_p7, %p1029_p11 }
 0x5b8   : > { %p609_p2 = pneg %p608_p10 }
 0x5ba   : > { %797 = dma.done.wait (%p609_p2), %s455_s20, 128  }
 0x5bb   : > { %799 = vsyncadd (%p609_p2), %s455_s20, 4294967168  ;;  %p17_p13 = scmp.ge.s32.totalorder %s897_s24, 4   ;;  %s1031_s12 = smov %s806_s13 }
 0x5bc   : > { %s1032_s13 = smov %s810_s14  ;;  %s1033_s14 = smov %s914_s5 }
 0x5bd   : > { %s1034_s15 = smov %s897_s24  ;;  %19 = sbr.rel (!%p17_p13) target bundleno = 6 (0x6), region = 81 }
 0x5c2   :  { %460 = vsyncpa [#allocation3], 1 }
 0x5c3   :  { %462 = vsyncpa [#allocation3 + $0x1], 1 }
 0x5c4   :  { %463 = vsyncpa [#allocation6], 1 }
 0x5c5   :  { %464 = vsyncpa [#allocation4], 1 }
 0x5c6   :  { %466 = vsyncpa [#allocation4 + $0x1], 1 }

</bundles_post_ra>
